<compile_context>
chip_gen: v6e
topology: v6e:2x2x1
jax: 0.10.0
libtpu: 0.0.40
codegen_flags: <defaults>
</compile_context>

<pallas_src>
import jax
import jax.numpy as jnp
import numpy as np
from jax.experimental import pallas as pl
from jax.experimental.pallas import tpu as pltpu


def pdvf_kernel(x_ref, w1_ref, w2_ref, b12_ref, w3_ref, b3_ref, out_ref):
    # fc1: [H, D_in] @ [D_in, TB] -> [H, TB]; batch on lanes => N = TB wide.
    h1 = jnp.dot(w1_ref[...], x_ref[...], preferred_element_type=jnp.float32)
    h1 = jnp.maximum(h1 + b12_ref[:, 0:1], 0.0)                    # [H, TB]

    # fc2: [H, H] @ [H, TB] -> [H, TB]
    h2 = jnp.dot(w2_ref[...], h1, preferred_element_type=jnp.float32)
    h2 = jnp.maximum(h2 + b12_ref[:, 1:2], 0.0)                    # [H, TB]

    # fc3 (out_features == 1): VPU multiply + cross-sublane (XLU) reduce gives
    # a lane-dense [1, TB] row; bias is a scalar read from SMEM.
    out_ref[...] = (jnp.sum(h2 * w3_ref[...], axis=0, keepdims=True)
                    + b3_ref[0, 0])                                 # [1, TB]


def pdvf_forward(state, env_emb, policy_emb, params, *, batch_tile=2048):
    """Run the PDVF MLP.  Batch is tiled over a 1-D 'parallel' grid with batch
    on the lane axis; weights stay VMEM-resident across grid steps."""
    w1, w2, b12, w3, b3 = params
    B = state.shape[0]
    d_in = w1.shape[1]

    # Pack + transpose into one lane-dense [D_in, B] operand (batch on lanes).
    x_t = jnp.concatenate(
        [state.astype(jnp.float32).T,
         env_emb.astype(jnp.float32).T,
         policy_emb.astype(jnp.float32).T], axis=0)

    tb = B if B <= batch_tile else batch_tile
    grid = (pl.cdiv(B, tb),)                      # ragged last block is fine:
                                                  # per-lane compute, OOB lanes
                                                  # are never written back.

    res_spec = lambda a: pl.BlockSpec(a.shape, lambda i: (0, 0))   # grid-resident

    out = pl.pallas_call(
        pdvf_kernel,
        out_shape=jax.ShapeDtypeStruct((1, B), jnp.float32),
        grid=grid,
        in_specs=[
            pl.BlockSpec((d_in, tb), lambda i: (0, i)),            # activations
            res_spec(w1), res_spec(w2), res_spec(b12), res_spec(w3),
            pl.BlockSpec(memory_space=pltpu.MemorySpace.SMEM),     # b3 scalar
        ],
        out_specs=pl.BlockSpec((1, tb), lambda i: (0, i)),
        compiler_params=pltpu.CompilerParams(
            dimension_semantics=("parallel",)),
    )(x_t, w1, w2, b12, w3, b3)
    return out.T                                                   # [B, 1]


def orthogonal(key, out_features, in_features):
    """Deterministic orthogonal init, matching nn.init.orthogonal_ semantics
    (rows orthonormal when out <= in)."""
    rows, cols = out_features, in_features
    flat = jax.random.normal(key, (max(rows, cols), min(rows, cols)), jnp.float32)
    q, r = jnp.linalg.qr(flat)
    d = jnp.sign(jnp.diag(r))
    d = jnp.where(d == 0, 1.0, d)          # guard against exact-zero diagonal
    q = q * d
    if rows < cols:
        q = q.T
    return q[:rows, :cols]                 # [out, in]


def make_params(key, state_dim, env_emb_dim, policy_emb_dim, hidden_dim):
    num_inputs = state_dim + env_emb_dim + policy_emb_dim
    k1, k2, k3 = jax.random.split(key, 3)
    relu_gain = float(np.sqrt(2.0))        # nn.init.calculate_gain('relu')

    w1 = orthogonal(k1, hidden_dim, num_inputs) * relu_gain    # [H, D_in]
    w2 = orthogonal(k2, hidden_dim, hidden_dim) * relu_gain    # [H, H]
    w3 = orthogonal(k3, 1, hidden_dim)                         # [1, H]

    b12 = jnp.zeros((hidden_dim, 2), jnp.float32)              # cols = [b1, b2]
    b3 = jnp.zeros((1, 1), jnp.float32)
    return (w1, w2, b12, w3.T, b3)                             # w3 stored [H, 1]


def reference(state, env_emb, policy_emb, params):
    w1, w2, b12, w3c, b3 = params
    x = jnp.concatenate([state, env_emb, policy_emb], axis=1).astype(jnp.float32)
    h = jnp.maximum(x @ w1.T + b12[:, 0], 0.0)
    h = jnp.maximum(h @ w2.T + b12[:, 1], 0.0)
    return h @ w3c + b3[0, 0]


if __name__ == "__main__":
    # small shapes consistent with the module's forward
    batch = 2
    state_dim = 8
    env_emb_dim = 8
    policy_emb_dim = 8
    hidden_dim = 32

    key = jax.random.PRNGKey(0)
    kp, ks, ke, kpe = jax.random.split(key, 4)

    params = make_params(kp, state_dim, env_emb_dim, policy_emb_dim, hidden_dim)
    state = jax.random.normal(ks, (batch, state_dim), jnp.float32)
    env_emb = jax.random.normal(ke, (batch, env_emb_dim), jnp.float32)
    policy_emb = jax.random.normal(kpe, (batch, policy_emb_dim), jnp.float32)

    val = pdvf_forward(state, env_emb, policy_emb, params)
    jax.block_until_ready(val)
    assert val.shape == (batch, 1)
    ref = reference(state, env_emb, policy_emb, params)
    np.testing.assert_allclose(np.asarray(val), np.asarray(ref), rtol=1e-5, atol=1e-5)

    # second check: small tile forces a multi-step grid with a ragged last
    # block (no wrapper padding), exercising the pipelined boundary handling.
    kb = jax.random.split(jax.random.PRNGKey(1), 3)
    big_b = 260
    st2 = jax.random.normal(kb[0], (big_b, state_dim), jnp.float32)
    ee2 = jax.random.normal(kb[1], (big_b, env_emb_dim), jnp.float32)
    pe2 = jax.random.normal(kb[2], (big_b, policy_emb_dim), jnp.float32)
    val2 = pdvf_forward(st2, ee2, pe2, params, batch_tile=128)
    jax.block_until_ready(val2)
    assert val2.shape == (big_b, 1)
    ref2 = reference(st2, ee2, pe2, params)
    np.testing.assert_allclose(np.asarray(val2), np.asarray(ref2), rtol=1e-5, atol=1e-5)

    print("KERNEL_OK")
</pallas_src>

<mosaic_0001>
module attributes {stable_mosaic.version = 11 : i64} {
  func.func @pdvf_kernel(%arg0: i32, %arg1: memref<24x2xf32, #tpu.memory_space<vmem>>, %arg2: memref<32x24xf32, #tpu.memory_space<vmem>>, %arg3: memref<32x32xf32, #tpu.memory_space<vmem>>, %arg4: memref<32x2xf32, #tpu.memory_space<vmem>>, %arg5: memref<32x1xf32, #tpu.memory_space<vmem>>, %arg6: memref<1x1xf32, #tpu.memory_space<smem>>, %arg7: memref<1x2xf32, #tpu.memory_space<vmem>>) attributes {dimension_semantics = [#tpu.dimension_semantics<parallel>], iteration_bounds = array<i64: 1>, scalar_prefetch = 0 : i64, scratch_operands = 0 : i64, tpu.core_type = #tpu.core_type<tc>, window_params = [{transform_indices = @transform_0, window_bounds = array<i64: 24, 2>}, {pipeline_mode = #tpu.pipeline_mode<synchronous>, transform_indices = @transform_1, window_bounds = array<i64: 32, 24>}, {pipeline_mode = #tpu.pipeline_mode<synchronous>, transform_indices = @transform_2, window_bounds = array<i64: 32, 32>}, {pipeline_mode = #tpu.pipeline_mode<synchronous>, transform_indices = @transform_3, window_bounds = array<i64: 32, 2>}, {pipeline_mode = #tpu.pipeline_mode<synchronous>, transform_indices = @transform_4, window_bounds = array<i64: 32, 1>}, {transform_indices = @transform_5, window_bounds = array<i64: 1, 1>}, {transform_indices = @transform_6, window_bounds = array<i64: 1, 2>}]} {
    %c0 = arith.constant 0 : index
    %c0_0 = arith.constant 0 : index
    %0 = vector.load %arg2[%c0, %c0_0] : memref<32x24xf32, #tpu.memory_space<vmem>>, vector<32x24xf32>
    %c0_1 = arith.constant 0 : index
    %c0_2 = arith.constant 0 : index
    %1 = vector.load %arg1[%c0_1, %c0_2] : memref<24x2xf32, #tpu.memory_space<vmem>>, vector<24x2xf32>
    %cst = arith.constant dense<0.000000e+00> : vector<32x2xf32>
    %2 = tpu.matmul %0, %1, %cst {dimension_numbers = #tpu.dot_dimension_numbers<[1], [0], [0], [1], [0, 0, 1, 1], [], []>} : vector<32x24xf32>, vector<24x2xf32>, vector<32x2xf32> -> vector<32x2xf32>
    %c0_3 = arith.constant 0 : index
    %c0_4 = arith.constant 0 : index
    %3 = vector.load %arg4[%c0_3, %c0_4] : memref<32x2xf32, #tpu.memory_space<vmem>>, vector<32x1xf32>
    %4 = vector.broadcast %3 : vector<32x1xf32> to vector<32x2xf32>
    %5 = arith.addf %2, %4 : vector<32x2xf32>
    %cst_5 = arith.constant 0.000000e+00 : f32
    %6 = vector.broadcast %cst_5 : f32 to vector<32x2xf32>
    %7 = arith.maximumf %5, %6 : vector<32x2xf32>
    %c0_6 = arith.constant 0 : index
    %c0_7 = arith.constant 0 : index
    %8 = vector.load %arg3[%c0_6, %c0_7] : memref<32x32xf32, #tpu.memory_space<vmem>>, vector<32x32xf32>
    %cst_8 = arith.constant dense<0.000000e+00> : vector<32x2xf32>
    %9 = tpu.matmul %8, %7, %cst_8 {dimension_numbers = #tpu.dot_dimension_numbers<[1], [0], [0], [1], [0, 0, 1, 1], [], []>} : vector<32x32xf32>, vector<32x2xf32>, vector<32x2xf32> -> vector<32x2xf32>
    %c0_9 = arith.constant 0 : index
    %c1 = arith.constant 1 : index
    %10 = vector.load %arg4[%c0_9, %c1] : memref<32x2xf32, #tpu.memory_space<vmem>>, vector<32x1xf32>
    %11 = vector.broadcast %10 : vector<32x1xf32> to vector<32x2xf32>
    %12 = arith.addf %9, %11 : vector<32x2xf32>
    %cst_10 = arith.constant 0.000000e+00 : f32
    %13 = vector.broadcast %cst_10 : f32 to vector<32x2xf32>
    %14 = arith.maximumf %12, %13 : vector<32x2xf32>
    %c0_11 = arith.constant 0 : index
    %c0_12 = arith.constant 0 : index
    %15 = vector.load %arg5[%c0_11, %c0_12] : memref<32x1xf32, #tpu.memory_space<vmem>>, vector<32x1xf32>
    %16 = vector.broadcast %15 : vector<32x1xf32> to vector<32x2xf32>
    %17 = arith.mulf %14, %16 : vector<32x2xf32>
    %cst_13 = arith.constant dense<0.000000e+00> : vector<2xf32>
    %18 = vector.multi_reduction <add>, %17, %cst_13 [0] : vector<32x2xf32> to vector<2xf32>
    %19 = vector.shape_cast %18 : vector<2xf32> to vector<1x2xf32>
    %c0_14 = arith.constant 0 : index
    %c0_15 = arith.constant 0 : index
    %20 = memref.load %arg6[%c0_14, %c0_15] : memref<1x1xf32, #tpu.memory_space<smem>>
    %21 = vector.broadcast %20 : f32 to vector<1x2xf32>
    %22 = arith.addf %19, %21 : vector<1x2xf32>
    %c0_16 = arith.constant 0 : index
    %c0_17 = arith.constant 0 : index
    %23 = vector.load %arg7[%c0_16, %c0_17] : memref<1x2xf32, #tpu.memory_space<vmem>>, vector<1x2xf32>
    tpu.vector_store %arg7[%c0_16, %c0_17], %22 {strides = array<i32>} : memref<1x2xf32, #tpu.memory_space<vmem>>, vector<1x2xf32>,
    return
  }
  func.func @transform_0(%arg0: i32) -> (i32, i32) {
    %c0_i32 = arith.constant 0 : i32
    %c0_i32_0 = arith.constant 0 : i32
    return %c0_i32, %arg0 : i32, i32
  }
  func.func @transform_1(%arg0: i32) -> (i32, i32) {
    %c0_i32 = arith.constant 0 : i32
    %c0_i32_0 = arith.constant 0 : i32
    %c0_i32_1 = arith.constant 0 : i32
    return %c0_i32, %c0_i32_0 : i32, i32
  }
  func.func @transform_2(%arg0: i32) -> (i32, i32) {
    %c0_i32 = arith.constant 0 : i32
    %c0_i32_0 = arith.constant 0 : i32
    %c0_i32_1 = arith.constant 0 : i32
    return %c0_i32, %c0_i32_0 : i32, i32
  }
  func.func @transform_3(%arg0: i32) -> (i32, i32) {
    %c0_i32 = arith.constant 0 : i32
    %c0_i32_0 = arith.constant 0 : i32
    %c0_i32_1 = arith.constant 0 : i32
    return %c0_i32, %c0_i32_0 : i32, i32
  }
  func.func @transform_4(%arg0: i32) -> (i32, i32) {
    %c0_i32 = arith.constant 0 : i32
    %c0_i32_0 = arith.constant 0 : i32
    %c0_i32_1 = arith.constant 0 : i32
    return %c0_i32, %c0_i32_0 : i32, i32
  }
  func.func @transform_5(%arg0: i32) -> (i32, i32) {
    %c0_i32 = arith.constant 0 : i32
    %c0_i32_0 = arith.constant 0 : i32
    %c0_i32_1 = arith.constant 0 : i32
    return %c0_i32, %c0_i32_0 : i32, i32
  }
  func.func @transform_6(%arg0: i32) -> (i32, i32) {
    %c0_i32 = arith.constant 0 : i32
    %c0_i32_0 = arith.constant 0 : i32
    return %c0_i32, %arg0 : i32, i32
  }
}

</mosaic_0001>

<bundles_post_ra>
// kernel: tpu_custom_call.1
= control target key start
LH: loop header
LB: loop body
LE: loop exit
PB: predicated region body
PF: predicated region fallthrough
CT: control target
= control target key end

     0   :  { %vm56_vm0 = vcmask 195584   ;;  %v421_v3 = vmov 0   ;;  %s530_s0 = inlined_call_operand.vmem [shape: f32[24,2], index: 0, kind: input, shape index: {}]   ;;  %s531_s1 = inlined_call_operand.vmem [shape: f32[32,24], index: 1, kind: input, shape index: {}]   ;;  %s532_s2 = inlined_call_operand.vmem [shape: f32[32,32], index: 2, kind: input, shape index: {}]   ;;  %s533_s3 = inlined_call_operand.vmem [shape: f32[32,2], index: 3, kind: input, shape index: {}]   ;;  %s534_s4 = inlined_call_operand.vmem [shape: f32[32,1], index: 4, kind: input, shape index: {}]   ;;  %s535_s5 = inlined_call_operand.<no memory space> [shape: f32[1,1], index: 5, kind: input, shape index: {}]   ;;  %s536_s6 = inlined_call_operand.hbm [shape: f32[1,2], index: 6, kind: output, shape index: {}]  }
   0x1   :  { %v31_v0 = vld [vmem:[%s530_s0 + $0x10] sm:$0xff]  ;;  %v30_v1 = vld [vmem:[%s530_s0 + $0x8] sm:$0xff]  ;;  %v25_v2 = vld [vmem:[%s531_s1] sm:$0xff]  ;;  %394 = vset.pattern.permute.xlu1 %v421_v3  ;;  %393 = vset.pattern.permute.xlu0 %v421_v3 }
   0x2   :  { %364 = vmatprep.subr.mxu0 %v31_v0  ;;  %v29_v4 = vld [vmem:[%s530_s0] sm:$0xff]  ;;  %370 = vmatprep.mubr.msk.f32.mxu0 %vm56_vm0, %v25_v2  ;;  %v35_v5 = vld [vmem:[%s533_s3 + $0x18] sm:$0xff]  ;;  %v33_v6 = vld [vmem:[%s533_s3 + $0x8] sm:$0xff] }
   0x3   :  { %365 = vmatpush3.msra.mxu0 %v31_v0 }
   0x4   :  { %366 = vmatprep.subr.mxu0 %v30_v1 }
   0x5   :  { %12 = vsyncpa [#allocation4], 0  ;;  %367 = vmatpush3.msra.mxu0 %v30_v1  ;;  %v26_v7 = vld [vmem:[%s531_s1 + $0x8] sm:$0xff]  ;;  %53 = vperm.xlu0 %393, %v35_v5   ;;  %v27_v8 = vld [vmem:[%s531_s1 + $0x10] sm:$0xff]  ;;  %vm178_vm1 = vcmask 261120   ;;  %v422_v13 = vmov 1  }
   0x6   :  { %368 = vmatprep.subr.mxu0 %v29_v4  ;;  %43 = vperm.xlu1 %394, %v33_v6   ;;  %v34_v9 = vld [vmem:[%s533_s3 + $0x10] sm:$0xff]  ;;  %v32_v10 = vld [vmem:[%s533_s3] sm:$0xff]  ;;  %v28_v11 = vld [vmem:[%s531_s1 + $0x18] sm:$0xff]  ;;  %vm308_vm2 = vcmask 15360   ;;  %s423_s8 = smov [#allocation3]   ;;  %vm325_vm3 = vcmask 8192  }
   0x7   :  { %369 = vmatpush3.msra.mxu0 %v29_v4  ;;  %v158_v12 = vld [vmem:[%s532_s2] sm:$0xff]  ;;  %v281_v15 = vld [vmem:[%s534_s4 + $0x8] sm:$0xff]  ;;  %v282_v16 = vld [vmem:[%s534_s4 + $0x10] sm:$0xff]  ;;  %s333_s9 = sshll.u32 %s423_s8, 4  ;;  %s334_s9 = int_to_ptr.vmem [resolvable:$true] %s333_s9 }
   0x8   :  { %371 = vmatmul.mubr.msk.f32.vlgmr.msra.gmra.mxu0 %vm56_vm0, %v26_v7  ;;  %384 = vmatprep.mubr.msk.f32.mxu1 %vm178_vm1, %v158_v12  ;;  %v280_v14 = vld [vmem:[%s534_s4] sm:$0xff]  ;;  %v283_v17 = vld [vmem:[%s534_s4 + $0x18] sm:$0xff]  ;;  %v159_v34 = vld [vmem:[%s532_s2 + $0x8] sm:$0xff]  ;;  %s399_s10 = scalar_lea.vmem %s334_s9, 16  ;;  %s403_s0 = scalar_lea.vmem %s334_s9, 32 }
   0x9   :  { %373 = vmatprep.mubr.msk.f32.mxu0 %vm56_vm0, %v27_v8  ;;  %48 = vperm.xlu0 %393, %v34_v9   ;;  %v160_v35 = vld [vmem:[%s532_s2 + $0x10] sm:$0xff]  ;;  %v161_v36 = vld [vmem:[%s532_s2 + $0x18] sm:$0xff]  ;;  %p400_p0 = scmp.ne.s32.totalorder %s334_s9, %s399_s10  ;;  %p404_p1 = scmp.lt.s32.totalorder %s334_s9, %s334_s9 }
   0xa   :  { %38 = vperm.xlu1 %394, %v32_v10   ;;  %p405_p2 = scmp.lt.s32.totalorder %s403_s0, %s399_s10 }
   0xc   :  { %374 = vmatmul.mubr.msk.f32.gmra.mxu0 %vm56_vm0, %v28_v11  ;;  %p406_p3 = por %p405_p2, %p404_p1 }
   0xd   :  { %395 = vset.pattern.permute.xlu0 %v422_v13 }
   0xe   :  { %396 = vset.pattern.permute.xlu1 %v422_v13  ;;  %163 = vperm.xlu0 %395, %v32_v10   ;;  %p407_p4 = pnand %p406_p3, %p400_p0 }
   0xf   :  { %167 = vperm.xlu1 %396, %v33_v6  }
  0x12   :  { %175 = vperm.xlu0 %395, %v35_v5  }
  0x13   :  { %171 = vperm.xlu1 %396, %v34_v9   ;;  %v323_v9 = vstv %s535_s5 }
  0x16   :  { %398 = vset.pattern.permute.xlu0 %v421_v3 }
  0x17   :  { %397 = vset.pattern.permute.xlu1 %v421_v3  ;;  %291 = vperm.xlu0 %398, %v281_v15  }
  0x18   :  { %286 = vperm.xlu1 %397, %v280_v14  }
  0x1c   :  { %296 = vperm.xlu1 %397, %v282_v16  }
  0x20   :  { %301 = vperm.xlu1 %397, %v283_v17  }
  0x80   :  { %v54_v18 = vpop.permute.xlu0 %53 }
  0x81   :  { %v44_v19 = vpop.permute.xlu1 %43 }
  0x84   :  { %v49_v23 = vpop.permute.xlu0 %48 }
  0x85   :  { %v39_v25 = vpop.permute.xlu1 %38 }
  0x89   :  { %v164_v39 = vpop.permute.xlu0 %163 }
  0x8a   :  { %v168_v37 = vpop.permute.xlu1 %167 }
  0x8d   :  { %v176_v41 = vpop.permute.xlu0 %175 }
  0x8e   :  { %v172_v38 = vpop.permute.xlu1 %171 }
  0x92   :  { %v292_v48 = vpop.permute.xlu0 %291 }
  0x93   :  { %v287_v40 = vpop.permute.xlu1 %286 }
  0x97   :  { %v297_v45 = vpop.permute.xlu1 %296 }
  0x9b   :  { %v302_v59 = vpop.permute.xlu1 %301 }
  0xc8   :  { %v372_v20 = vpop.f32.mrf.mxu0 }
  0xc9   :  { %v141_v27 = vadd.f32 %v372_v20, %v44_v19 }
  0xca   :  { %v135_v21 = vpop.f32.mrf.mxu0 }
  0xcb   :  { %v136_v30 = vadd.f32 %v135_v21, %v39_v25  ;;  %v155_v32 = vmax.f32 %v141_v27, 0.0 }
  0xcc   :  { %v375_v22 = vpop.f32.mrf.mxu0 }
  0xcd   :  { %v151_v24 = vadd.f32 %v375_v22, %v54_v18  ;;  %v154_v33 = vmax.f32 %v136_v30, 0.0 }
  0xce   :  { %v145_v26 = vpop.f32.mrf.mxu0 }
  0xcf   :  { %v157_v28 = vmax.f32 %v151_v24, 0.0  ;;  %v146_v29 = vadd.f32 %v145_v26, %v49_v23 }
  0xd1   :  { %v156_v31 = vmax.f32 %v146_v29, 0.0  ;;  %376 = vmatprep.subr.mxu1 %v157_v28 }
  0xd2   :  { %377 = vmatpush3.msra.mxu1 %v157_v28 }
  0xd3   :  { %378 = vmatprep.subr.mxu1 %v156_v31 }
  0xd4   :  { %379 = vmatpush3.msra.mxu1 %v156_v31 }
  0xd5   :  { %380 = vmatprep.subr.mxu1 %v155_v32 }
  0xd6   :  { %381 = vmatpush3.msra.mxu1 %v155_v32 }
  0xd7   :  { %382 = vmatprep.subr.mxu1 %v154_v33 }
  0xd8   :  { %383 = vmatpush3.msra.mxu1 %v154_v33 }
  0xd9   :  { %385 = vmatmul.mubr.msk.f32.vlgmr.msra.gmra.mxu1 %vm178_vm1, %v159_v34 }
  0xda   :  { %387 = vmatprep.mubr.msk.f32.mxu1 %vm178_vm1, %v160_v35 }
  0xdd   :  { %388 = vmatmul.mubr.msk.f32.gmra.mxu1 %vm178_vm1, %v161_v36 }
 0x199   :  { %v386_v42 = vpop.f32.mrf.mxu1 }
 0x19a   :  { %v263_v43 = vadd.f32 %v386_v42, %v168_v37 }
 0x19b   :  { %v257_v44 = vpop.f32.mrf.mxu1 }
 0x19c   :  { %v277_v46 = vmax.f32 %v263_v43, 0.0  ;;  %v258_v47 = vadd.f32 %v257_v44, %v164_v39 }
 0x19d   :  { %v389_v49 = vpop.f32.mrf.mxu1 }
 0x19e   :  { %v276_v50 = vmax.f32 %v258_v47, 0.0  ;;  %v273_v51 = vadd.f32 %v389_v49, %v176_v41  ;;  %v305_v54 = vmul.f32 %v292_v48, %v277_v46 }
 0x19f   :  { %v267_v52 = vpop.f32.mrf.mxu1 }
 0x1a0   :  { %v304_v53 = vmul.f32 %v287_v40, %v276_v50  ;;  %v279_v55 = vmax.f32 %v273_v51, 0.0  ;;  %v268_v56 = vadd.f32 %v267_v52, %v172_v38  ;;  %v310_v60 = vsel %vm308_vm2, %v305_v54, 0.0 }
 0x1a2   :  { %v309_v57 = vsel %vm308_vm2, %v304_v53, 0.0  ;;  %v278_v58 = vmax.f32 %v268_v56, 0.0  ;;  %v307_v61 = vmul.f32 %v302_v59, %v279_v55 }
 0x1a3   :  { %v311_v63 = vadd.f32 %v310_v60, %v309_v57 }
 0x1a4   :  { %v306_v62 = vmul.f32 %v297_v45, %v278_v58  ;;  %v314_v2 = vsel %vm308_vm2, %v307_v61, 0.0 }
 0x1a6   :  { %v312_v0 = vsel %vm308_vm2, %v306_v62, 0.0 }
 0x1a7   :  { %v313_v1 = vadd.f32 %v312_v0, %v311_v63 }
 0x1a9   :  { %v315_v3 = vadd.f32 %v314_v2, %v313_v1 }
 0x1ab   :  { %v316_v4 = vrot.slane %v315_v3, 4 }
 0x1ad   :  { %v317_v5 = vadd.f32 %v316_v4, %v315_v3 }
 0x1af   :  { %v318_v6 = vrot.slane %v317_v5, 2 }
 0x1b1   :  { %v319_v7 = vadd.f32 %v318_v6, %v317_v5 }
 0x1b3   :  { %v320_v8 = vrot.slane %v319_v7, 1 }
 0x1b5   :  { %v321_v10 = vadd.f32 %v320_v8, %v319_v7 }
 0x1b7   :  { %v324_v11 = vadd.f32 %v323_v9, %v321_v10 }
 0x1b9   :  { %326 = vst.msk [vmem:[#allocation3] sm:$0x1] %vm325_vm3, %v324_v11 }
 0x1ba   :  { %410 = shalt.err (!%p407_p4)
}
 0x1bb   :  { %336 = dma.vmem_to_hbm [thread:$0]  %s334_s9, 16, %s536_s6, [#allocation4]  }
 0x1bc   :  { %419 = dma.done.wait [#allocation4], 16  }
 0x1bd   :  { %420 = vsyncadd [#allocation4], 4294967280 }
 0x1be   :  { %340 = vsyncpa [#allocation4], 1 }

</bundles_post_ra>
